<compile_context>
chip_gen: v5e
topology: v5e:2x2
jax: 0.10.0
libtpu: 0.0.40
codegen_flags: <defaults>
</compile_context>

<pallas_src>
import functools

import jax
import jax.numpy as jnp
from jax.experimental import pallas as pl
from jax.experimental.pallas import tpu as pltpu


def _round_up(x, m):
    return (x + m - 1) // m * m


def _choose_block_b(B, max_batch_tile):
    """Batch tile: single step for small B; >=2 'parallel' steps (v7x megacore)
    and 512-1024-row tiles (per-step overhead amortized) for large B."""
    if B <= 256:
        return B
    return min(max_batch_tile, _round_up((B + 1) // 2, 8))


def _fused_ac_kernel(n_actions, x_ref, w1_ref, b1_ref, w2_ref, b2_ref,
                     act_ref, val_ref):
    # x_ref  : (Bt, D)    raw state tile (any float dtype; cast to bf16 here)
    # w1_ref : (D, Hp)    [actor W1 | critic W1 | zero pad]          (bf16, resident)
    # b1_ref : (1, Hp)    fused layer-1 bias                          (f32, resident)
    # w2_ref : (Hp, Np)   block-diag [actor W2 ; critic W2] + zero pad(bf16, resident)
    # b2_ref : (1, Np)    fused layer-2 bias                          (f32, resident)
    # act_ref: (Bt, A)    action logits
    # val_ref: (Bt, 1)    value
    x = x_ref[...].astype(jnp.bfloat16)                       # VPU cast, hidden under MXU
    h = jnp.dot(x, w1_ref[...], preferred_element_type=jnp.float32)
    h = jnp.maximum(h + b1_ref[...], 0.0)                     # bias + ReLU in f32
    out = jnp.dot(h.astype(jnp.bfloat16), w2_ref[...],
                  preferred_element_type=jnp.float32)
    out = out + b2_ref[...]
    act_ref[...] = out[:, :n_actions].astype(act_ref.dtype)
    val_ref[...] = out[:, n_actions:n_actions + 1].astype(val_ref.dtype)


def pack_params(params, *, compute_dtype=jnp.bfloat16):
    """One-time packing of the 8 per-head tensors into 4 fused, lane-dense
    tensors. Call this when parameters change (e.g. after an optimizer step),
    NOT per forward call."""
    wa1, ba1 = params["wa1"], params["ba1"]   # (D, H), (1, H)
    wa2, ba2 = params["wa2"], params["ba2"]   # (H, A), (1, A)
    wc1, bc1 = params["wc1"], params["bc1"]   # (D, H), (1, H)
    wc2, bc2 = params["wc2"], params["bc2"]   # (H, 1), (1, 1)
    D, H = wa1.shape
    A = wa2.shape[1]
    Hp = _round_up(2 * H, 128)                # lane-dense fused hidden width
    Np = _round_up(A + 1, 128)                # lane-dense fused head width

    # Layer 1: actor/critic side by side; zero pad columns stay exactly 0
    # through ReLU (bias pad is 0) and meet zero rows of w2 -> no effect.
    w1 = jnp.zeros((D, Hp), jnp.float32)
    w1 = w1.at[:, :H].set(wa1.astype(jnp.float32))
    w1 = w1.at[:, H:2 * H].set(wc1.astype(jnp.float32))
    b1 = jnp.zeros((1, Hp), jnp.float32)
    b1 = b1.at[:, :H].set(ba1.astype(jnp.float32))
    b1 = b1.at[:, H:2 * H].set(bc1.astype(jnp.float32))

    # Layer 2: block diagonal keeps the two heads independent.
    w2 = jnp.zeros((Hp, Np), jnp.float32)
    w2 = w2.at[:H, :A].set(wa2.astype(jnp.float32))
    w2 = w2.at[H:2 * H, A:A + 1].set(wc2.astype(jnp.float32))
    b2 = jnp.zeros((1, Np), jnp.float32)
    b2 = b2.at[:, :A].set(ba2.astype(jnp.float32))
    b2 = b2.at[:, A:A + 1].set(bc2.astype(jnp.float32))

    return dict(w1=w1.astype(compute_dtype), b1=b1,
                w2=w2.astype(compute_dtype), b2=b2,
                n_actions=A)


def actor_critic_forward(state, packed, *, max_batch_tile=1024):
    """Fused actor/critic forward.

    state : (B, D) float array
    packed: output of pack_params (pre-packed, bf16 weights + f32 biases)
    Returns (action_pred (B, A) f32, value_pred (B, 1) f32).
    """
    B, D = state.shape
    A = packed["n_actions"]
    w1, b1, w2, b2 = packed["w1"], packed["b1"], packed["w2"], packed["b2"]
    Hp = w1.shape[1]
    Np = w2.shape[1]

    block_b = _choose_block_b(B, max_batch_tile)
    grid = (pl.cdiv(B, block_b),)   # partial tail block handled by Pallas; no jnp.pad

    act, val = pl.pallas_call(
        functools.partial(_fused_ac_kernel, A),
        out_shape=(jax.ShapeDtypeStruct((B, A), jnp.float32),
                   jax.ShapeDtypeStruct((B, 1), jnp.float32)),
        grid=grid,
        in_specs=[
            pl.BlockSpec((block_b, D), lambda i: (i, 0)),   # state tile
            pl.BlockSpec((D, Hp), lambda i: (0, 0)),        # fused W1 (resident)
            pl.BlockSpec((1, Hp), lambda i: (0, 0)),        # fused b1 (resident)
            pl.BlockSpec((Hp, Np), lambda i: (0, 0)),       # fused W2 (resident)
            pl.BlockSpec((1, Np), lambda i: (0, 0)),        # fused b2 (resident)
        ],
        out_specs=(pl.BlockSpec((block_b, A), lambda i: (i, 0)),
                   pl.BlockSpec((block_b, 1), lambda i: (i, 0))),
        compiler_params=pltpu.CompilerParams(
            dimension_semantics=("parallel",),
        ),
    )(state, w1, b1, w2, b2)
    return act, val


def init_params(key, in_dim, hidden_dim, n_actions):
    """Deterministic synthetic parameter init (PyTorch-Linear-like scale)."""
    ks = jax.random.split(key, 8)

    def lin(kw, kb, fan_in, fan_out):
        bound = 1.0 / jnp.sqrt(fan_in)
        w = jax.random.uniform(kw, (fan_in, fan_out), jnp.float32, -bound, bound)
        b = jax.random.uniform(kb, (1, fan_out), jnp.float32, -bound, bound)
        return w, b

    wa1, ba1 = lin(ks[0], ks[1], in_dim, hidden_dim)
    wa2, ba2 = lin(ks[2], ks[3], hidden_dim, n_actions)
    wc1, bc1 = lin(ks[4], ks[5], in_dim, hidden_dim)
    wc2, bc2 = lin(ks[6], ks[7], hidden_dim, 1)
    return dict(wa1=wa1, ba1=ba1, wa2=wa2, ba2=ba2,
                wc1=wc1, bc1=bc1, wc2=wc2, bc2=bc2)


def actor_critic_ref(state, p):
    """Pure-JAX f32 reference matching the PyTorch module."""
    h_a = jnp.maximum(state @ p["wa1"] + p["ba1"], 0.0)
    act = h_a @ p["wa2"] + p["ba2"]
    h_c = jnp.maximum(state @ p["wc1"] + p["bc1"], 0.0)
    val = h_c @ p["wc2"] + p["bc2"]
    return act, val


def actor_critic_ref_bf16(state, p):
    """Reference matching the kernel's numerics (bf16 inputs/weights/hidden,
    f32 accumulation and biases)."""
    bf = lambda a: a.astype(jnp.bfloat16).astype(jnp.float32)
    x = bf(state)
    h_a = jnp.maximum(x @ bf(p["wa1"]) + p["ba1"], 0.0)
    act = bf(h_a) @ bf(p["wa2"]) + p["ba2"]
    h_c = jnp.maximum(x @ bf(p["wc1"]) + p["bc1"], 0.0)
    val = bf(h_c) @ bf(p["wc2"]) + p["bc2"]
    return act, val


if __name__ == "__main__":
    key = jax.random.PRNGKey(0)
    k_state, k_params = jax.random.split(key)

    # Small shapes consistent with a policy-gradient agent on a vector env state.
    batch, in_dim, hidden_dim, n_actions = 8, 16, 32, 4

    state = jax.random.normal(k_state, (batch, in_dim), dtype=jnp.float32)
    params = init_params(k_params, in_dim, hidden_dim, n_actions)

    # Pack once (amortized across forward calls).
    packed = jax.tree_util.tree_map(jax.block_until_ready,
                                    {k: v for k, v in pack_params(params).items()
                                     if k != "n_actions"})
    packed["n_actions"] = n_actions

    action_pred, value_pred = actor_critic_forward(state, packed)
    action_pred = jax.block_until_ready(action_pred)
    value_pred = jax.block_until_ready(value_pred)

    assert action_pred.shape == (batch, n_actions)
    assert value_pred.shape == (batch, 1)

    # Tight check against a reference with matching bf16 rounding.
    act_bf, val_bf = actor_critic_ref_bf16(state, params)
    assert jnp.allclose(action_pred, act_bf, atol=1e-3, rtol=1e-3)
    assert jnp.allclose(value_pred, val_bf, atol=1e-3, rtol=1e-3)

    # Loose check against the pure-f32 PyTorch-equivalent reference.
    act_ref, val_ref = actor_critic_ref(state, params)
    assert jnp.allclose(action_pred, act_ref, atol=5e-2, rtol=5e-2)
    assert jnp.allclose(value_pred, val_ref, atol=5e-2, rtol=5e-2)

    print("KERNEL_OK")
</pallas_src>

<mosaic_0001>
module attributes {stable_mosaic.version = 11 : i64} {
  func.func @_fused_ac_kernel(%arg0: i32, %arg1: memref<8x16xf32, #tpu.memory_space<vmem>>, %arg2: memref<16x128xbf16, #tpu.memory_space<vmem>>, %arg3: memref<1x128xf32, #tpu.memory_space<vmem>>, %arg4: memref<128x128xbf16, #tpu.memory_space<vmem>>, %arg5: memref<1x128xf32, #tpu.memory_space<vmem>>, %arg6: memref<8x4xf32, #tpu.memory_space<vmem>>, %arg7: memref<8x1xf32, #tpu.memory_space<vmem>>) attributes {dimension_semantics = [#tpu.dimension_semantics<parallel>], iteration_bounds = array<i64: 1>, scalar_prefetch = 0 : i64, scratch_operands = 0 : i64, tpu.core_type = #tpu.core_type<tc>, window_params = [{transform_indices = @transform_0, window_bounds = array<i64: 8, 16>}, {pipeline_mode = #tpu.pipeline_mode<synchronous>, transform_indices = @transform_1, window_bounds = array<i64: 16, 128>}, {pipeline_mode = #tpu.pipeline_mode<synchronous>, transform_indices = @transform_2, window_bounds = array<i64: 1, 128>}, {pipeline_mode = #tpu.pipeline_mode<synchronous>, transform_indices = @transform_3, window_bounds = array<i64: 128, 128>}, {pipeline_mode = #tpu.pipeline_mode<synchronous>, transform_indices = @transform_4, window_bounds = array<i64: 1, 128>}, {transform_indices = @transform_5, window_bounds = array<i64: 8, 4>}, {transform_indices = @transform_6, window_bounds = array<i64: 8, 1>}]} {
    %c0 = arith.constant 0 : index
    %c0_0 = arith.constant 0 : index
    %0 = vector.load %arg1[%c0, %c0_0] : memref<8x16xf32, #tpu.memory_space<vmem>>, vector<8x16xf32>
    %1 = arith.truncf %0 : vector<8x16xf32> to vector<8x16xbf16>
    %c0_1 = arith.constant 0 : index
    %c0_2 = arith.constant 0 : index
    %2 = vector.load %arg2[%c0_1, %c0_2] : memref<16x128xbf16, #tpu.memory_space<vmem>>, vector<16x128xbf16>
    %cst = arith.constant dense<0.000000e+00> : vector<8x128xf32>
    %3 = tpu.matmul %1, %2, %cst {dimension_numbers = #tpu.dot_dimension_numbers<[1], [0], [0], [1], [0, 0, 1, 1], [], []>} : vector<8x16xbf16>, vector<16x128xbf16>, vector<8x128xf32> -> vector<8x128xf32>
    %c0_3 = arith.constant 0 : index
    %c0_4 = arith.constant 0 : index
    %4 = vector.load %arg3[%c0_3, %c0_4] : memref<1x128xf32, #tpu.memory_space<vmem>>, vector<1x128xf32>
    %5 = vector.broadcast %4 : vector<1x128xf32> to vector<8x128xf32>
    %6 = arith.addf %3, %5 : vector<8x128xf32>
    %cst_5 = arith.constant 0.000000e+00 : f32
    %7 = vector.broadcast %cst_5 : f32 to vector<8x128xf32>
    %8 = arith.maximumf %6, %7 : vector<8x128xf32>
    %9 = arith.truncf %8 : vector<8x128xf32> to vector<8x128xbf16>
    %c0_6 = arith.constant 0 : index
    %c0_7 = arith.constant 0 : index
    %10 = vector.load %arg4[%c0_6, %c0_7] : memref<128x128xbf16, #tpu.memory_space<vmem>>, vector<128x128xbf16>
    %cst_8 = arith.constant dense<0.000000e+00> : vector<8x128xf32>
    %11 = tpu.matmul %9, %10, %cst_8 {dimension_numbers = #tpu.dot_dimension_numbers<[1], [0], [0], [1], [0, 0, 1, 1], [], []>} : vector<8x128xbf16>, vector<128x128xbf16>, vector<8x128xf32> -> vector<8x128xf32>
    %c0_9 = arith.constant 0 : index
    %c0_10 = arith.constant 0 : index
    %12 = vector.load %arg5[%c0_9, %c0_10] : memref<1x128xf32, #tpu.memory_space<vmem>>, vector<1x128xf32>
    %13 = vector.broadcast %12 : vector<1x128xf32> to vector<8x128xf32>
    %14 = arith.addf %11, %13 : vector<8x128xf32>
    %15 = vector.extract_strided_slice %14 {offsets = [0, 0], sizes = [8, 4], strides = [1, 1]} : vector<8x128xf32> to vector<8x4xf32>
    %c0_11 = arith.constant 0 : index
    %c0_12 = arith.constant 0 : index
    %16 = vector.load %arg6[%c0_11, %c0_12] : memref<8x4xf32, #tpu.memory_space<vmem>>, vector<8x4xf32>
    tpu.vector_store %arg6[%c0_11, %c0_12], %15 {strides = array<i32>} : memref<8x4xf32, #tpu.memory_space<vmem>>, vector<8x4xf32>,
    %17 = vector.extract_strided_slice %14 {offsets = [0, 4], sizes = [8, 1], strides = [1, 1]} : vector<8x128xf32> to vector<8x1xf32>
    %c0_13 = arith.constant 0 : index
    %c0_14 = arith.constant 0 : index
    %18 = vector.load %arg7[%c0_13, %c0_14] : memref<8x1xf32, #tpu.memory_space<vmem>>, vector<8x1xf32>
    tpu.vector_store %arg7[%c0_13, %c0_14], %17 {strides = array<i32>} : memref<8x1xf32, #tpu.memory_space<vmem>>, vector<8x1xf32>,
    return
  }
  func.func @transform_0(%arg0: i32) -> (i32, i32) {
    %c0_i32 = arith.constant 0 : i32
    %c0_i32_0 = arith.constant 0 : i32
    return %arg0, %c0_i32 : i32, i32
  }
  func.func @transform_1(%arg0: i32) -> (i32, i32) {
    %c0_i32 = arith.constant 0 : i32
    %c0_i32_0 = arith.constant 0 : i32
    %c0_i32_1 = arith.constant 0 : i32
    return %c0_i32, %c0_i32_0 : i32, i32
  }
  func.func @transform_2(%arg0: i32) -> (i32, i32) {
    %c0_i32 = arith.constant 0 : i32
    %c0_i32_0 = arith.constant 0 : i32
    %c0_i32_1 = arith.constant 0 : i32
    return %c0_i32, %c0_i32_0 : i32, i32
  }
  func.func @transform_3(%arg0: i32) -> (i32, i32) {
    %c0_i32 = arith.constant 0 : i32
    %c0_i32_0 = arith.constant 0 : i32
    %c0_i32_1 = arith.constant 0 : i32
    return %c0_i32, %c0_i32_0 : i32, i32
  }
  func.func @transform_4(%arg0: i32) -> (i32, i32) {
    %c0_i32 = arith.constant 0 : i32
    %c0_i32_0 = arith.constant 0 : i32
    %c0_i32_1 = arith.constant 0 : i32
    return %c0_i32, %c0_i32_0 : i32, i32
  }
  func.func @transform_5(%arg0: i32) -> (i32, i32) {
    %c0_i32 = arith.constant 0 : i32
    %c0_i32_0 = arith.constant 0 : i32
    return %arg0, %c0_i32 : i32, i32
  }
  func.func @transform_6(%arg0: i32) -> (i32, i32) {
    %c0_i32 = arith.constant 0 : i32
    %c0_i32_0 = arith.constant 0 : i32
    return %arg0, %c0_i32 : i32, i32
  }
}

</mosaic_0001>

<bundles_post_ra>
// kernel: tpu_custom_call.1
= control target key start
LH: loop header
LB: loop body
LE: loop exit
PB: predicated region body
PF: predicated region fallthrough
CT: control target
= control target key end

     0   :  { %12 = vsyncpa [#allocation3], 0  ;;  %s392_s0 = inlined_call_operand.hbm [shape: f32[8,16], index: 0, kind: input, shape index: {}]   ;;  %s393_s1 = inlined_call_operand.hbm [shape: bf16[16,128], index: 1, kind: input, shape index: {}]   ;;  %s394_s2 = inlined_call_operand.vmem [shape: f32[1,128], index: 2, kind: input, shape index: {}]   ;;  %s395_s3 = inlined_call_operand.hbm [shape: bf16[128,128], index: 3, kind: input, shape index: {}]   ;;  %s396_s4 = inlined_call_operand.vmem [shape: f32[1,128], index: 4, kind: input, shape index: {}]   ;;  %s397_s5 = inlined_call_operand.vmem [shape: f32[8,4], index: 5, kind: output, shape index: {0}]   ;;  %s398_s6 = inlined_call_operand.vmem [shape: f32[8,1], index: 6, kind: output, shape index: {1}]  }
   0x1   :  { %13 = vsyncpa [#allocation5], 0  ;;  %s29_s23 = sshll.u32 %s393_s1, 4  ;;  %s330_s24 = smov [#allocation4]   ;;  %s30_s23 = int_to_ptr.hbm [resolvable:$true] %s29_s23 }
   0x2   :  { %s31_s25 = sshll.u32 %s330_s24, 4  ;;  %s19_s28 = sshll.u32 %s392_s0, 4  ;;  %s32_s25 = int_to_ptr.vmem [resolvable:$true] %s31_s25  ;;  %s20_s28 = int_to_ptr.hbm [resolvable:$true] %s19_s28 }
   0x3   :  { %s331_s29 = smov 64   ;;  %s332_s30 = smov 4  }
   0x4   :  { %37 = dma.hbm_to_vmem [thread:$0]  %s30_s23, 128, %s32_s25, [#allocation5], %s331_s29, %s331_s29, %s332_s30  }
   0x5   :  { %s333_s7 = smov [#allocation2]   ;;  %s44_s11 = sshll.u32 %s395_s3, 4  ;;  %s45_s11 = int_to_ptr.hbm [resolvable:$true] %s44_s11 }
   0x6   :  { %s21_s8 = sshll.u32 %s333_s7, 4  ;;  %s334_s1 = smov [#allocation6]   ;;  %s22_s8 = int_to_ptr.vmem [resolvable:$true] %s21_s8 }
   0x7   :  { %24 = dma.hbm_to_vmem [thread:$0]  %s20_s28, 128, %s22_s8, [#allocation3]  }
   0x8   :  { %s46_s12 = sshll.u32 %s334_s1, 4  ;;  %s47_s12 = int_to_ptr.vmem [resolvable:$true] %s46_s12 }
   0x9   :  { %52 = dma.hbm_to_vmem [thread:$0]  %s45_s11, 1024, %s47_s12, [#allocation5], %s331_s29, %s331_s29, %s332_s30  }
   0xa   :  { %326 = dma.done.wait [#allocation3], 128  }
   0xb   :  { %327 = vsyncadd [#allocation3], 4294967168 }
   0xc   :  { %328 = dma.done.wait [#allocation5], 1152  }
   0xd   :  { %329 = vsyncadd [#allocation5], 4294966144  ;;  %v237_v0 = vld [vmem:[#allocation4] sm:$0xff]  ;;  %v68_v1 = vld [vmem:[#allocation2] sm:$0xff]  ;;  %vm82_vm0 = vcmask 130048   ;;  %vm182_vm1 = vcmask 31744  }
   0xe   :  { %v245_v2 = vld [vmem:[#allocation6 + $0x38] sm:$0xff]  ;;  %v69_v3 = vpack.c.bf16 %v68_v1, %v68_v1  ;;  %93 = vmatpush.bf16.msra.mxu0 %v237_v0  ;;  %v244_v4 = vld [vmem:[#allocation6 + $0x30] sm:$0xff]  ;;  %v243_v5 = vld [vmem:[#allocation6 + $0x28] sm:$0xff]  ;;  %s335_s17 = smov 124   ;;  %vm188_vm2 = vcmask 7168  }
   0xf   :  { %169 = vmatpush.bf16.msra.mxu1 %v245_v2  ;;  %v242_v6 = vld [vmem:[#allocation6 + $0x20] sm:$0xff]  ;;  %v241_v7 = vld [vmem:[#allocation6 + $0x18] sm:$0xff]  ;;  %v240_v8 = vld [vmem:[#allocation6 + $0x10] sm:$0xff] }
  0x10   :  { %v239_v9 = vld [vmem:[#allocation6 + $0x8] sm:$0xff]  ;;  %v238_v10 = vld [vmem:[#allocation6] sm:$0xff]  ;;  %v252_v11 = vld [vmem:[%s394_s2] ss:$0 sm:$0xff] }
  0x11   :  { %204 = vmatmul.msk.bf16.vlgmr.msra.gmra.mxu0 %vm82_vm0, %v69_v3  ;;  %v253_v17 = vld [vmem:[%s396_s4] ss:$0 sm:$0xff] }
  0x13   :  { %170 = vmatpush.bf16.msra.mxu1 %v244_v4 }
  0x17   :  { %171 = vmatpush.bf16.msra.mxu1 %v243_v5 }
  0x1b   :  { %172 = vmatpush.bf16.msra.mxu1 %v242_v6 }
  0x1f   :  { %173 = vmatpush.bf16.msra.mxu1 %v241_v7 }
  0x23   :  { %174 = vmatpush.bf16.msra.mxu1 %v240_v8 }
  0x27   :  { %175 = vmatpush.bf16.msra.mxu1 %v239_v9 }
  0x2b   :  { %176 = vmatpush.bf16.msra.mxu1 %v238_v10 }
  0x8e   :  { %v95_v12 = vpop.f32.mrf.mxu0 }
  0x8f   :  { %v96_v13 = vadd.f32 %v252_v11, %v95_v12 }
  0x91   :  { %v99_v14 = vmax.f32 %v96_v13, 0.0 }
  0x93   :  { %v100_v15 = vpack.c.bf16 %v99_v14, %v99_v14 }
  0x95   :  { %177 = vmatmul.bf16.vlgmr.msra.gmra.mxu1 %v100_v15 }
  0x96   :  { %v97_v16 = vpop.f32.mrf.mxu0 }
 0x112   :  { %v178_v18 = vpop.f32.mrf.mxu1 }
 0x113   :  { %v179_v19 = vadd.f32 %v253_v17, %v178_v18 }
 0x115   :  { %183 = vst.msk [vmem:[%s397_s5] sm:$0xff] %vm182_vm1, %v179_v19  ;;  %185 = vrot.lane.b32.xlu0 %v179_v19, %s335_s17 }
 0x11a   :  { %v180_v20 = vpop.f32.mrf.mxu1 }
 0x187   :  { %v186_v21 = vpop.permute.xlu0 %185 }
 0x188   :  { %189 = vst.msk [vmem:[%s398_s6] sm:$0xff] %vm188_vm2, %v186_v21 }
 0x189   :  { %198 = vsyncpa [#allocation3], 1 }
 0x18a   :  { %199 = vsyncpa [#allocation5], 1 }

</bundles_post_ra>
